<compile_context>
chip_gen: v5e
topology: v5e:2x2
jax: 0.10.0
libtpu: 0.0.40
codegen_flags: <defaults>
</compile_context>

<pallas_src>
import jax
import jax.numpy as jnp
from jax.experimental import pallas as pl
from jax.experimental.pallas import tpu as pltpu


def _round_up(x, m):
    return ((x + m - 1) // m) * m


def _cdiv(a, b):
    return -(-a // b)


def _elu(x):
    # ELU with alpha=1.0. exp argument clamped to <=0 so the masked branch never
    # produces inf. (expm1 kept out for Mosaic lowering portability.)
    return jnp.where(x > 0, x, jnp.exp(jnp.minimum(x, 0.0)) - 1.0)


def oni_mlp_kernel(x_ref, w1_ref, b1_ref, w2_ref, b2_ref, w3_ref, b3_ref, o_ref):
    # In-kernel bf16 cast of the f32 x tile (removes the wrapper-side cast pass).
    x = x_ref[...].astype(jnp.bfloat16)

    # Layer 1: (BN/bias-folded) Linear -> ELU. bf16 MXU inputs, f32 accumulate.
    h = jnp.dot(x, w1_ref[...], preferred_element_type=jnp.float32)
    h = _elu(h + b1_ref[...])

    # Layer 2: (BN/bias-folded) Linear -> ELU.
    h = jnp.dot(h.astype(jnp.bfloat16), w2_ref[...], preferred_element_type=jnp.float32)
    h = _elu(h + b2_ref[...])

    # Output layer (columns padded to a lane-dense multiple of 128).
    y = jnp.dot(h.astype(jnp.bfloat16), w3_ref[...], preferred_element_type=jnp.float32)
    o_ref[...] = (y + b3_ref[...]).astype(o_ref.dtype)


def oni_mlp_forward(x, folded, out_dim, *, block_rows=1024, out_dtype=jnp.float32):
    """x: (B, D0) f32.  folded: dict from fold_params().  Returns (B, out_dim) out_dtype.

    out_dtype=jnp.bfloat16 halves the lane-dense output-slab writeback when
    out_dim << 128 (upcast downstream if f32 is required)."""
    B, D0 = x.shape
    w1, b1 = folded["w1"], folded["b1"]
    w2, b2 = folded["w2"], folded["b2"]
    w3, b3 = folded["w3"], folded["b3"]
    D1 = w1.shape[1]
    D2 = w2.shape[1]
    OUTP = w3.shape[1]          # lane-dense padded output width (multiple of 128)
    assert w1.shape[0] == D0

    out_bytes = jnp.dtype(out_dtype).itemsize

    # Per-generation VMEM budget: ~75% of physical capacity (96 MiB on v5e/v6e's
    # 128 MiB, 48 MiB on v7x's 64 MiB) leaving headroom for Mosaic internal scratch.
    try:
        vmem_cap = int(pltpu.get_tpu_info().vmem_capacity_bytes)
    except Exception:
        vmem_cap = 64 << 20     # conservative fallback (v7x per-TC size)
    budget = (vmem_cap * 3) // 4

    # Footprint model (conservative: weights counted double-buffered so the same
    # TB is safe even on the no-pipeline_mode fallback path).
    fixed = (2 * (D0 * D1 + D1 * D2 + D2 * OUTP) * 2      # weights (bf16)
             + 2 * (D1 + D2 + OUTP) * 4                   # biases (f32)
             + (1 << 20))                                  # misc scratch margin
    per_row = (2 * D0 * 4                                  # x tile, 2 buffers, f32
               + 2 * OUTP * out_bytes                      # out tile, 2 buffers
               + D0 * 2                                    # bf16 copy of x tile
               + (D1 + D2) * 6                             # h1/h2 in f32 + bf16
               + OUTP * 4)                                 # y accumulator (f32)
    tb_budget = max(8, ((budget - fixed) // (per_row * 5 // 4)) // 8 * 8)
    tb_max = max(8, min(_round_up(block_rows, 8), tb_budget))

    # >=2 grid steps when B allows it (keeps both v7x TensorCores busy; ~free on
    # single-TC v5e/v6e), and balanced tiles to minimize ragged-tail waste.
    min_steps = 2 if B > 8 else 1
    n_steps = max(min_steps, _cdiv(B, tb_max))
    TB = min(tb_max, _round_up(_cdiv(B, n_steps), 8))
    grid = (n_steps,)

    rows = n_steps * TB
    cost = pl.CostEstimate(
        flops=2 * rows * (D0 * D1 + D1 * D2 + D2 * OUTP),
        transcendentals=rows * (D1 + D2),
        bytes_accessed=(B * D0 * 4
                        + (D0 * D1 + D1 * D2 + D2 * OUTP) * 2
                        + (D1 + D2 + OUTP) * 4
                        + B * OUTP * out_bytes),
    )

    x_spec = pl.BlockSpec((TB, D0), lambda i: (i, 0))        # tiled over batch
    out_spec = pl.BlockSpec((TB, OUTP), lambda i: (i, 0))

    def weight_specs(pipeline_mode):
        kw = {} if pipeline_mode is None else dict(pipeline_mode=pipeline_mode)
        # Constant index_map: weights/biases stay VMEM-resident across grid steps.
        return [
            pl.BlockSpec((D0, D1), lambda i: (0, 0), **kw),
            pl.BlockSpec((1, D1), lambda i: (0, 0), **kw),
            pl.BlockSpec((D1, D2), lambda i: (0, 0), **kw),
            pl.BlockSpec((1, D2), lambda i: (0, 0), **kw),
            pl.BlockSpec((D2, OUTP), lambda i: (0, 0), **kw),
            pl.BlockSpec((1, OUTP), lambda i: (0, 0), **kw),
        ]

    def run(pipeline_mode):
        return pl.pallas_call(
            oni_mlp_kernel,
            out_shape=jax.ShapeDtypeStruct((B, OUTP), out_dtype),
            grid=grid,
            in_specs=[x_spec] + weight_specs(pipeline_mode),
            out_specs=out_spec,
            compiler_params=pltpu.CompilerParams(
                dimension_semantics=("parallel",),
                vmem_limit_bytes=int(budget),
            ),
            cost_estimate=cost,
        )(x, w1, b1, w2, b2, w3, b3)

    try:
        # Single-buffer the constant weight/bias blocks (double-buffering an
        # unchanging block is pure VMEM waste).
        out = run(pl.Buffered(1))
    except Exception:
        # Portability fallback for jax builds where pipeline_mode isn't honored
        # on the top-level TPU pallas_call pipeline.
        out = run(None)

    return out[:, :out_dim]


def init_params(key, input_dim, output_dim, L=2, eps=1e-5):
    """Deterministic parameter init mirroring ONI_MLP.__init__ shapes (L=2).

    Linear weights stored transposed as (in_features, out_features) so the
    kernel computes x @ W + b directly on the MXU. BatchNorm is represented by
    its eval-mode folded affine (scale, shift)."""
    dims = [input_dim // (2 ** l) for l in range(L + 1)]  # [D0, D1, D2]
    keys = jax.random.split(key, 16)
    ki = iter(range(16))

    def linear(kw, kb, d_in, d_out):
        bound = 1.0 / jnp.sqrt(d_in)
        w = jax.random.uniform(kw, (d_in, d_out), jnp.float32, -bound, bound)
        b = jax.random.uniform(kb, (1, d_out), jnp.float32, -bound, bound)
        return w, b

    def bn_affine(kg, kb, km, kv, d):
        gamma = 1.0 + 0.1 * jax.random.normal(kg, (1, d), jnp.float32)
        beta = 0.1 * jax.random.normal(kb, (1, d), jnp.float32)
        running_mean = 0.1 * jax.random.normal(km, (1, d), jnp.float32)
        running_var = jnp.abs(1.0 + 0.1 * jax.random.normal(kv, (1, d), jnp.float32))
        scale = gamma / jnp.sqrt(running_var + eps)
        shift = beta - running_mean * scale
        return scale, shift

    w1, b1 = linear(keys[next(ki)], keys[next(ki)], dims[0], dims[1])
    s1, t1 = bn_affine(keys[next(ki)], keys[next(ki)], keys[next(ki)], keys[next(ki)], dims[1])
    w2, b2 = linear(keys[next(ki)], keys[next(ki)], dims[1], dims[2])
    s2, t2 = bn_affine(keys[next(ki)], keys[next(ki)], keys[next(ki)], keys[next(ki)], dims[2])
    w3, b3 = linear(keys[next(ki)], keys[next(ki)], dims[2], output_dim)

    return dict(w1=w1, b1=b1, s1=s1, t1=t1,
                w2=w2, b2=b2, s2=s2, t2=t2,
                w3=w3, b3=b3)


def fold_params(p, lane=128):
    """Fold eval-mode BN affine + linear bias into the weights, cast weights to
    bf16 for the MXU, and zero-pad ALL hidden/output widths to lane-dense
    multiples of `lane` (128; 256 can further help large hidden dims on v6e/v7x).

    Zero padding is exact: padded bias columns give ELU(0)=0 and the matching
    padded weight rows of the next layer are zero."""
    d0, d1 = p["w1"].shape
    d2 = p["w2"].shape[1]
    out_dim = p["w3"].shape[1]
    d1p = _round_up(d1, lane)
    d2p = _round_up(d2, lane)
    outp = _round_up(out_dim, lane)

    w1 = p["w1"] * p["s1"]
    b1 = p["b1"] * p["s1"] + p["t1"]
    w2 = p["w2"] * p["s2"]
    b2 = p["b2"] * p["s2"] + p["t2"]
    w3, b3 = p["w3"], p["b3"]

    def pad2(a, rows, cols):
        return jnp.pad(a, ((0, rows - a.shape[0]), (0, cols - a.shape[1])))

    return dict(
        w1=pad2(w1, d0, d1p).astype(jnp.bfloat16),
        b1=pad2(b1, 1, d1p).astype(jnp.float32),
        w2=pad2(w2, d1p, d2p).astype(jnp.bfloat16),
        b2=pad2(b2, 1, d2p).astype(jnp.float32),
        w3=pad2(w3, d2p, outp).astype(jnp.bfloat16),
        b3=pad2(b3, 1, outp).astype(jnp.float32),
    )


def oni_mlp_reference_f32(x, p):
    """Pure-JAX f32 reference of the original (un-folded, eval-mode BN) forward."""
    h = x @ p["w1"] + p["b1"]
    h = _elu(h * p["s1"] + p["t1"])
    h = h @ p["w2"] + p["b2"]
    h = _elu(h * p["s2"] + p["t2"])
    return h @ p["w3"] + p["b3"]


def oni_mlp_reference_folded(x, fp, out_dim):
    """Pure-JAX mirror of the exact kernel math (folded params, bf16 MXU inputs)."""
    h = jnp.dot(x.astype(jnp.bfloat16), fp["w1"], preferred_element_type=jnp.float32) + fp["b1"]
    h = _elu(h)
    h = jnp.dot(h.astype(jnp.bfloat16), fp["w2"], preferred_element_type=jnp.float32) + fp["b2"]
    h = _elu(h)
    y = jnp.dot(h.astype(jnp.bfloat16), fp["w3"], preferred_element_type=jnp.float32) + fp["b3"]
    return y[:, :out_dim]


if __name__ == "__main__":
    batch = 24            # ragged vs TB=16 -> exercises the 2-step grid + clipping
    input_dim = 32
    output_dim = 4

    key = jax.random.PRNGKey(0)
    kx, kp = jax.random.split(key)
    x = jax.random.normal(kx, (batch, input_dim), jnp.float32)
    params = init_params(kp, input_dim, output_dim)
    folded = fold_params(params)

    y = oni_mlp_forward(x, folded, output_dim)
    y = jax.block_until_ready(y)
    assert y.shape == (batch, output_dim)

    # Tight check against a pure-JAX mirror of the kernel's exact (bf16-MXU) math.
    y_exact = oni_mlp_reference_folded(x, folded, output_dim)
    assert jnp.allclose(y, y_exact, atol=2e-4, rtol=2e-4), "mismatch vs folded/bf16 reference"

    # Loose check against the full-precision eval-mode reference (bf16 weight quantization).
    y_f32 = oni_mlp_reference_f32(x, params)
    assert jnp.allclose(y, y_f32, atol=5e-2, rtol=5e-2), "mismatch vs f32 eval-mode reference"

    print("KERNEL_OK")
</pallas_src>

<mosaic_0001>
module attributes {stable_mosaic.version = 11 : i64} {
  func.func @oni_mlp_kernel(%arg0: i32, %arg1: memref<16x32xf32, #tpu.memory_space<vmem>>, %arg2: memref<32x128xbf16, #tpu.memory_space<vmem>>, %arg3: memref<1x128xf32, #tpu.memory_space<vmem>>, %arg4: memref<128x128xbf16, #tpu.memory_space<vmem>>, %arg5: memref<1x128xf32, #tpu.memory_space<vmem>>, %arg6: memref<128x128xbf16, #tpu.memory_space<vmem>>, %arg7: memref<1x128xf32, #tpu.memory_space<vmem>>, %arg8: memref<16x128xf32, #tpu.memory_space<vmem>>) attributes {dimension_semantics = [#tpu.dimension_semantics<parallel>], iteration_bounds = array<i64: 2>, scalar_prefetch = 0 : i64, scratch_operands = 0 : i64, tpu.core_type = #tpu.core_type<tc>, window_params = [{transform_indices = @transform_0, window_bounds = array<i64: 16, 32>}, {pipeline_mode = #tpu.pipeline_mode<synchronous>, transform_indices = @transform_1, window_bounds = array<i64: 32, 128>}, {pipeline_mode = #tpu.pipeline_mode<synchronous>, transform_indices = @transform_2, window_bounds = array<i64: 1, 128>}, {pipeline_mode = #tpu.pipeline_mode<synchronous>, transform_indices = @transform_3, window_bounds = array<i64: 128, 128>}, {pipeline_mode = #tpu.pipeline_mode<synchronous>, transform_indices = @transform_4, window_bounds = array<i64: 1, 128>}, {pipeline_mode = #tpu.pipeline_mode<synchronous>, transform_indices = @transform_5, window_bounds = array<i64: 128, 128>}, {pipeline_mode = #tpu.pipeline_mode<synchronous>, transform_indices = @transform_6, window_bounds = array<i64: 1, 128>}, {transform_indices = @transform_7, window_bounds = array<i64: 16, 128>}]} {
    %c0 = arith.constant 0 : index
    %c0_0 = arith.constant 0 : index
    %0 = vector.load %arg1[%c0, %c0_0] : memref<16x32xf32, #tpu.memory_space<vmem>>, vector<16x32xf32>
    %1 = arith.truncf %0 : vector<16x32xf32> to vector<16x32xbf16>
    %c0_1 = arith.constant 0 : index
    %c0_2 = arith.constant 0 : index
    %2 = vector.load %arg2[%c0_1, %c0_2] : memref<32x128xbf16, #tpu.memory_space<vmem>>, vector<32x128xbf16>
    %cst = arith.constant dense<0.000000e+00> : vector<16x128xf32>
    %3 = tpu.matmul %1, %2, %cst {dimension_numbers = #tpu.dot_dimension_numbers<[1], [0], [0], [1], [0, 0, 1, 1], [], []>} : vector<16x32xbf16>, vector<32x128xbf16>, vector<16x128xf32> -> vector<16x128xf32>
    %c0_3 = arith.constant 0 : index
    %c0_4 = arith.constant 0 : index
    %4 = vector.load %arg3[%c0_3, %c0_4] : memref<1x128xf32, #tpu.memory_space<vmem>>, vector<1x128xf32>
    %5 = vector.broadcast %4 : vector<1x128xf32> to vector<16x128xf32>
    %6 = arith.addf %3, %5 : vector<16x128xf32>
    %cst_5 = arith.constant 0.000000e+00 : f32
    %7 = vector.broadcast %cst_5 : f32 to vector<16x128xf32>
    %8 = arith.cmpf ogt, %6, %7 : vector<16x128xf32>
    %cst_6 = arith.constant 0.000000e+00 : f32
    %9 = vector.broadcast %cst_6 : f32 to vector<16x128xf32>
    %10 = arith.minimumf %6, %9 : vector<16x128xf32>
    %11 = math.exp %10 : vector<16x128xf32>
    %cst_7 = arith.constant 1.000000e+00 : f32
    %12 = vector.broadcast %cst_7 : f32 to vector<16x128xf32>
    %13 = arith.subf %11, %12 : vector<16x128xf32>
    %14 = arith.select %8, %6, %13 : vector<16x128xi1>, vector<16x128xf32>
    %15 = arith.truncf %14 : vector<16x128xf32> to vector<16x128xbf16>
    %c0_8 = arith.constant 0 : index
    %c0_9 = arith.constant 0 : index
    %16 = vector.load %arg4[%c0_8, %c0_9] : memref<128x128xbf16, #tpu.memory_space<vmem>>, vector<128x128xbf16>
    %cst_10 = arith.constant dense<0.000000e+00> : vector<16x128xf32>
    %17 = tpu.matmul %15, %16, %cst_10 {dimension_numbers = #tpu.dot_dimension_numbers<[1], [0], [0], [1], [0, 0, 1, 1], [], []>} : vector<16x128xbf16>, vector<128x128xbf16>, vector<16x128xf32> -> vector<16x128xf32>
    %c0_11 = arith.constant 0 : index
    %c0_12 = arith.constant 0 : index
    %18 = vector.load %arg5[%c0_11, %c0_12] : memref<1x128xf32, #tpu.memory_space<vmem>>, vector<1x128xf32>
    %19 = vector.broadcast %18 : vector<1x128xf32> to vector<16x128xf32>
    %20 = arith.addf %17, %19 : vector<16x128xf32>
    %cst_13 = arith.constant 0.000000e+00 : f32
    %21 = vector.broadcast %cst_13 : f32 to vector<16x128xf32>
    %22 = arith.cmpf ogt, %20, %21 : vector<16x128xf32>
    %cst_14 = arith.constant 0.000000e+00 : f32
    %23 = vector.broadcast %cst_14 : f32 to vector<16x128xf32>
    %24 = arith.minimumf %20, %23 : vector<16x128xf32>
    %25 = math.exp %24 : vector<16x128xf32>
    %cst_15 = arith.constant 1.000000e+00 : f32
    %26 = vector.broadcast %cst_15 : f32 to vector<16x128xf32>
    %27 = arith.subf %25, %26 : vector<16x128xf32>
    %28 = arith.select %22, %20, %27 : vector<16x128xi1>, vector<16x128xf32>
    %29 = arith.truncf %28 : vector<16x128xf32> to vector<16x128xbf16>
    %c0_16 = arith.constant 0 : index
    %c0_17 = arith.constant 0 : index
    %30 = vector.load %arg6[%c0_16, %c0_17] : memref<128x128xbf16, #tpu.memory_space<vmem>>, vector<128x128xbf16>
    %cst_18 = arith.constant dense<0.000000e+00> : vector<16x128xf32>
    %31 = tpu.matmul %29, %30, %cst_18 {dimension_numbers = #tpu.dot_dimension_numbers<[1], [0], [0], [1], [0, 0, 1, 1], [], []>} : vector<16x128xbf16>, vector<128x128xbf16>, vector<16x128xf32> -> vector<16x128xf32>
    %c0_19 = arith.constant 0 : index
    %c0_20 = arith.constant 0 : index
    %32 = vector.load %arg7[%c0_19, %c0_20] : memref<1x128xf32, #tpu.memory_space<vmem>>, vector<1x128xf32>
    %33 = vector.broadcast %32 : vector<1x128xf32> to vector<16x128xf32>
    %34 = arith.addf %31, %33 : vector<16x128xf32>
    %c0_21 = arith.constant 0 : index
    %c0_22 = arith.constant 0 : index
    %35 = vector.load %arg8[%c0_21, %c0_22] : memref<16x128xf32, #tpu.memory_space<vmem>>, vector<16x128xf32>
    tpu.vector_store %arg8[%c0_21, %c0_22], %34 {strides = array<i32>} : memref<16x128xf32, #tpu.memory_space<vmem>>, vector<16x128xf32>,
    return
  }
  func.func @transform_0(%arg0: i32) -> (i32, i32) {
    %c0_i32 = arith.constant 0 : i32
    %c0_i32_0 = arith.constant 0 : i32
    return %arg0, %c0_i32 : i32, i32
  }
  func.func @transform_1(%arg0: i32) -> (i32, i32) {
    %c0_i32 = arith.constant 0 : i32
    %c0_i32_0 = arith.constant 0 : i32
    %c0_i32_1 = arith.constant 0 : i32
    return %c0_i32, %c0_i32_0 : i32, i32
  }
  func.func @transform_2(%arg0: i32) -> (i32, i32) {
    %c0_i32 = arith.constant 0 : i32
    %c0_i32_0 = arith.constant 0 : i32
    %c0_i32_1 = arith.constant 0 : i32
    return %c0_i32, %c0_i32_0 : i32, i32
  }
  func.func @transform_3(%arg0: i32) -> (i32, i32) {
    %c0_i32 = arith.constant 0 : i32
    %c0_i32_0 = arith.constant 0 : i32
    %c0_i32_1 = arith.constant 0 : i32
    return %c0_i32, %c0_i32_0 : i32, i32
  }
  func.func @transform_4(%arg0: i32) -> (i32, i32) {
    %c0_i32 = arith.constant 0 : i32
    %c0_i32_0 = arith.constant 0 : i32
    %c0_i32_1 = arith.constant 0 : i32
    return %c0_i32, %c0_i32_0 : i32, i32
  }
  func.func @transform_5(%arg0: i32) -> (i32, i32) {
    %c0_i32 = arith.constant 0 : i32
    %c0_i32_0 = arith.constant 0 : i32
    %c0_i32_1 = arith.constant 0 : i32
    return %c0_i32, %c0_i32_0 : i32, i32
  }
  func.func @transform_6(%arg0: i32) -> (i32, i32) {
    %c0_i32 = arith.constant 0 : i32
    %c0_i32_0 = arith.constant 0 : i32
    %c0_i32_1 = arith.constant 0 : i32
    return %c0_i32, %c0_i32_0 : i32, i32
  }
  func.func @transform_7(%arg0: i32) -> (i32, i32) {
    %c0_i32 = arith.constant 0 : i32
    %c0_i32_0 = arith.constant 0 : i32
    return %arg0, %c0_i32 : i32, i32
  }
}

module attributes {stable_mosaic.version = 11 : i64} {
  func.func @oni_mlp_kernel(%arg0: i32, %arg1: memref<16x32xf32, #tpu.memory_space<vmem>>, %arg2: memref<32x128xbf16, #tpu.memory_space<vmem>>, %arg3: memref<1x128xf32, #tpu.memory_space<vmem>>, %arg4: memref<128x128xbf16, #tpu.memory_space<vmem>>, %arg5: memref<1x128xf32, #tpu.memory_space<vmem>>, %arg6: memref<128x128xbf16, #tpu.memory_space<vmem>>, %arg7: memref<1x128xf32, #tpu.memory_space<vmem>>, %arg8: memref<16x128xf32, #tpu.memory_space<vmem>>) attributes {dimension_semantics = [#tpu.dimension_semantics<parallel>], iteration_bounds = array<i64: 2>, scalar_prefetch = 0 : i64, scratch_operands = 0 : i64, tpu.core_type = #tpu.core_type<tc>, window_params = [{transform_indices = @transform_0, window_bounds = array<i64: 16, 32>}, {pipeline_mode = #tpu.pipeline_mode<synchronous>, transform_indices = @transform_1, window_bounds = array<i64: 32, 128>}, {pipeline_mode = #tpu.pipeline_mode<synchronous>, transform_indices = @transform_2, window_bounds = array<i64: 1, 128>}, {pipeline_mode = #tpu.pipeline_mode<synchronous>, transform_indices = @transform_3, window_bounds = array<i64: 128, 128>}, {pipeline_mode = #tpu.pipeline_mode<synchronous>, transform_indices = @transform_4, window_bounds = array<i64: 1, 128>}, {pipeline_mode = #tpu.pipeline_mode<synchronous>, transform_indices = @transform_5, window_bounds = array<i64: 128, 128>}, {pipeline_mode = #tpu.pipeline_mode<synchronous>, transform_indices = @transform_6, window_bounds = array<i64: 1, 128>}, {transform_indices = @transform_7, window_bounds = array<i64: 16, 128>}]} {
    %c0 = arith.constant 0 : index
    %c0_0 = arith.constant 0 : index
    %0 = vector.load %arg1[%c0, %c0_0] : memref<16x32xf32, #tpu.memory_space<vmem>>, vector<16x32xf32>
    %1 = arith.truncf %0 : vector<16x32xf32> to vector<16x32xbf16>
    %c0_1 = arith.constant 0 : index
    %c0_2 = arith.constant 0 : index
    %2 = vector.load %arg2[%c0_1, %c0_2] : memref<32x128xbf16, #tpu.memory_space<vmem>>, vector<32x128xbf16>
    %cst = arith.constant dense<0.000000e+00> : vector<16x128xf32>
    %3 = tpu.matmul %1, %2, %cst {dimension_numbers = #tpu.dot_dimension_numbers<[1], [0], [0], [1], [0, 0, 1, 1], [], []>} : vector<16x32xbf16>, vector<32x128xbf16>, vector<16x128xf32> -> vector<16x128xf32>
    %c0_3 = arith.constant 0 : index
    %c0_4 = arith.constant 0 : index
    %4 = vector.load %arg3[%c0_3, %c0_4] : memref<1x128xf32, #tpu.memory_space<vmem>>, vector<1x128xf32>
    %5 = vector.broadcast %4 : vector<1x128xf32> to vector<16x128xf32>
    %6 = arith.addf %3, %5 : vector<16x128xf32>
    %cst_5 = arith.constant 0.000000e+00 : f32
    %7 = vector.broadcast %cst_5 : f32 to vector<16x128xf32>
    %8 = arith.cmpf ogt, %6, %7 : vector<16x128xf32>
    %cst_6 = arith.constant 0.000000e+00 : f32
    %9 = vector.broadcast %cst_6 : f32 to vector<16x128xf32>
    %10 = arith.minimumf %6, %9 : vector<16x128xf32>
    %11 = math.exp %10 : vector<16x128xf32>
    %cst_7 = arith.constant 1.000000e+00 : f32
    %12 = vector.broadcast %cst_7 : f32 to vector<16x128xf32>
    %13 = arith.subf %11, %12 : vector<16x128xf32>
    %14 = arith.select %8, %6, %13 : vector<16x128xi1>, vector<16x128xf32>
    %15 = arith.truncf %14 : vector<16x128xf32> to vector<16x128xbf16>
    %c0_8 = arith.constant 0 : index
    %c0_9 = arith.constant 0 : index
    %16 = vector.load %arg4[%c0_8, %c0_9] : memref<128x128xbf16, #tpu.memory_space<vmem>>, vector<128x128xbf16>
    %cst_10 = arith.constant dense<0.000000e+00> : vector<16x128xf32>
    %17 = tpu.matmul %15, %16, %cst_10 {dimension_numbers = #tpu.dot_dimension_numbers<[1], [0], [0], [1], [0, 0, 1, 1], [], []>} : vector<16x128xbf16>, vector<128x128xbf16>, vector<16x128xf32> -> vector<16x128xf32>
    %c0_11 = arith.constant 0 : index
    %c0_12 = arith.constant 0 : index
    %18 = vector.load %arg5[%c0_11, %c0_12] : memref<1x128xf32, #tpu.memory_space<vmem>>, vector<1x128xf32>
    %19 = vector.broadcast %18 : vector<1x128xf32> to vector<16x128xf32>
    %20 = arith.addf %17, %19 : vector<16x128xf32>
    %cst_13 = arith.constant 0.000000e+00 : f32
    %21 = vector.broadcast %cst_13 : f32 to vector<16x128xf32>
    %22 = arith.cmpf ogt, %20, %21 : vector<16x128xf32>
    %cst_14 = arith.constant 0.000000e+00 : f32
    %23 = vector.broadcast %cst_14 : f32 to vector<16x128xf32>
    %24 = arith.minimumf %20, %23 : vector<16x128xf32>
    %25 = math.exp %24 : vector<16x128xf32>
    %cst_15 = arith.constant 1.000000e+00 : f32
    %26 = vector.broadcast %cst_15 : f32 to vector<16x128xf32>
    %27 = arith.subf %25, %26 : vector<16x128xf32>
    %28 = arith.select %22, %20, %27 : vector<16x128xi1>, vector<16x128xf32>
    %29 = arith.truncf %28 : vector<16x128xf32> to vector<16x128xbf16>
    %c0_16 = arith.constant 0 : index
    %c0_17 = arith.constant 0 : index
    %30 = vector.load %arg6[%c0_16, %c0_17] : memref<128x128xbf16, #tpu.memory_space<vmem>>, vector<128x128xbf16>
    %cst_18 = arith.constant dense<0.000000e+00> : vector<16x128xf32>
    %31 = tpu.matmul %29, %30, %cst_18 {dimension_numbers = #tpu.dot_dimension_numbers<[1], [0], [0], [1], [0, 0, 1, 1], [], []>} : vector<16x128xbf16>, vector<128x128xbf16>, vector<16x128xf32> -> vector<16x128xf32>
    %c0_19 = arith.constant 0 : index
    %c0_20 = arith.constant 0 : index
    %32 = vector.load %arg7[%c0_19, %c0_20] : memref<1x128xf32, #tpu.memory_space<vmem>>, vector<1x128xf32>
    %33 = vector.broadcast %32 : vector<1x128xf32> to vector<16x128xf32>
    %34 = arith.addf %31, %33 : vector<16x128xf32>
    %c0_21 = arith.constant 0 : index
    %c0_22 = arith.constant 0 : index
    %35 = vector.load %arg8[%c0_21, %c0_22] : memref<16x128xf32, #tpu.memory_space<vmem>>, vector<16x128xf32>
    tpu.vector_store %arg8[%c0_21, %c0_22], %34 {strides = array<i32>} : memref<16x128xf32, #tpu.memory_space<vmem>>, vector<16x128xf32>,
    return
  }
  func.func @transform_0(%arg0: i32) -> (i32, i32) {
    %c0_i32 = arith.constant 0 : i32
    %c0_i32_0 = arith.constant 0 : i32
    return %arg0, %c0_i32 : i32, i32
  }
  func.func @transform_1(%arg0: i32) -> (i32, i32) {
    %c0_i32 = arith.constant 0 : i32
    %c0_i32_0 = arith.constant 0 : i32
    %c0_i32_1 = arith.constant 0 : i32
    return %c0_i32, %c0_i32_0 : i32, i32
  }
  func.func @transform_2(%arg0: i32) -> (i32, i32) {
    %c0_i32 = arith.constant 0 : i32
    %c0_i32_0 = arith.constant 0 : i32
    %c0_i32_1 = arith.constant 0 : i32
    return %c0_i32, %c0_i32_0 : i32, i32
  }
  func.func @transform_3(%arg0: i32) -> (i32, i32) {
    %c0_i32 = arith.constant 0 : i32
    %c0_i32_0 = arith.constant 0 : i32
    %c0_i32_1 = arith.constant 0 : i32
    return %c0_i32, %c0_i32_0 : i32, i32
  }
  func.func @transform_4(%arg0: i32) -> (i32, i32) {
    %c0_i32 = arith.constant 0 : i32
    %c0_i32_0 = arith.constant 0 : i32
    %c0_i32_1 = arith.constant 0 : i32
    return %c0_i32, %c0_i32_0 : i32, i32
  }
  func.func @transform_5(%arg0: i32) -> (i32, i32) {
    %c0_i32 = arith.constant 0 : i32
    %c0_i32_0 = arith.constant 0 : i32
    %c0_i32_1 = arith.constant 0 : i32
    return %c0_i32, %c0_i32_0 : i32, i32
  }
  func.func @transform_6(%arg0: i32) -> (i32, i32) {
    %c0_i32 = arith.constant 0 : i32
    %c0_i32_0 = arith.constant 0 : i32
    %c0_i32_1 = arith.constant 0 : i32
    return %c0_i32, %c0_i32_0 : i32, i32
  }
  func.func @transform_7(%arg0: i32) -> (i32, i32) {
    %c0_i32 = arith.constant 0 : i32
    %c0_i32_0 = arith.constant 0 : i32
    return %arg0, %c0_i32 : i32, i32
  }
}

</mosaic_0001>

<bundles_post_ra>
// kernel: tpu_custom_call.1
= control target key start
LH: loop header
LB: loop body
LE: loop exit
PB: predicated region body
PF: predicated region fallthrough
CT: control target
= control target key end

     0   :  { %s1435_s0 = inlined_call_operand.hbm [shape: f32[24,32], index: 0, kind: input, shape index: {}]   ;;  %s1436_s1 = inlined_call_operand.hbm [shape: bf16[32,128], index: 1, kind: input, shape index: {}]   ;;  %s1437_s2 = inlined_call_operand.vmem [shape: f32[1,128], index: 2, kind: input, shape index: {}]   ;;  %s1438_s3 = inlined_call_operand.hbm [shape: bf16[128,128], index: 3, kind: input, shape index: {}]   ;;  %s1439_s4 = inlined_call_operand.vmem [shape: f32[1,128], index: 4, kind: input, shape index: {}]   ;;  %s1440_s5 = inlined_call_operand.hbm [shape: bf16[128,128], index: 5, kind: input, shape index: {}]   ;;  %s1441_s6 = inlined_call_operand.vmem [shape: f32[1,128], index: 6, kind: input, shape index: {}]   ;;  %s1442_s7 = inlined_call_operand.hbm [shape: f32[24,128], index: 7, kind: output, shape index: {}]  }
   0x1   :  { %1446 = sst [smem:[#allocation16_spill]] %s1436_s1 }
   0x2   :  { %1447 = sst [smem:[#allocation17_spill]] %s1438_s3 }
   0x3   :  { %12 = vsyncpa [#allocation3], 0 }
   0x4   :  { %14 = vsyncpa [#allocation3 + $0x1], 0 }
   0x5   :  { %15 = vsyncpa [#allocation6], 0 }
   0x6   :  { %16 = vsyncpa [#allocation9], 0 }
   0x7   :  { %17 = vsyncpa [#allocation4], 0 }
   0x8   :  { %19 = vsyncpa [#allocation4 + $0x1], 0  ;;  %s1204_s24 = smov 0   ;;  %s1206_s25 = smov 0  }
   0x9   :  { %s1208_s26 = smov 0   ;;  %s1210_s27 = smov 0  }
   0xa LB: > { %s1225_s28 = sadd.s32 4294967295, %s1151_s27   ;;  %s725_s29 = sadd.s32 4294967294, %s1151_s27   ;;  %s1151_s27 = sphi %s1210_s27, %s1470_s27   ;;  %s1147_s26 = sphi %s1208_s26, %s1469_s26   ;;  %s1143_s25 = sphi %s1206_s25, %s1468_s25   ;;  %s1139_s24 = sphi %s1204_s24, %s1467_s24  }
   0xb   : > { %s1229_s30 = sadd.s32 1, %s1151_s27   ;;  %s32_s8 = sadd.s32 1, %s1147_s26 }
   0xc   : > { %s29_s9 = ssub.s32 %s1151_s27, %s1229_s30  ;;  %p39_p0 = scmp.ne.s32.totalorder %s1147_s26, %s1143_s25 }
   0xd   : > { %p30_p1 = scmp.eq.s32.totalorder %s29_s9, 0  ;;  %p40_p2 = scmp.eq.s32.totalorder %s1151_s27, 0 }
   0xe   : > { %p45_p3 = scmp.ne.s32.totalorder %s1143_s25, %s1139_s24  ;;  %p1445_p4 = scmp.eq.s32.totalorder %s1225_s28, 0 }
   0xf   : > { %s1241_s10 = scalar_select %p30_p1, %s1147_s26, %s32_s8  }
  0x10   : > { %p1243_p5 = por %p40_p2, %p39_p0  ;;  %p1249_p6 = por %p1445_p4, %p45_p3 }
  0x11   : > { %1448 = sst [smem:[#allocation15_spill]] %s1241_s10  ;;  %p195_p7 = scmp.eq.s32.totalorder %s1225_s28, 1 }
  0x12   : > { %p201_p8 = scmp.eq.s32.totalorder %s725_s29, 1  ;;  %p726_p9 = scmp.ge.s32.totalorder %s1151_s27, 1 }
  0x13   : > { %p208_p10 = scmp.lt.s32.totalorder %s1151_s27, 3  ;;  %p1256_p11 = por %p195_p7, %p39_p0 }
  0x14   : > { %p1260_p12 = por %p201_p8, %p45_p3  ;;  %s1454_s1 = sld [smem:[#allocation16_spill]] }
  0x15   : > { %p1264_p13 = pnand %p726_p9, %p208_p10  ;;  %s1153_s19 = smov [#allocation5]  }
  0x16   : > { %s1452_s14 = scalar_select %p1260_p12, 1, 0 }
  0x17   : > { %p864_p1 = pneg %p1264_p13  ;;  %s221_s20 = sshll.u32 %s1153_s19, 4  ;;  %s222_s20 = int_to_ptr.vmem [resolvable:$true] %s221_s20 }
  0x18   : > { %s1456_s3 = sld [smem:[#allocation17_spill]]  ;;  %s1154_s8 = smov 64  }
  0x19   : > { %p1275_p0 = pnand %p864_p1, %p1445_p4  ;;  %s1155_s9 = smov 4  }
  0x1a   : > { %s219_s18 = sshll.u32 %s1454_s1, 4  ;;  %s253_s19 = sshll.u32 %s1440_s5, 4  ;;  %s220_s18 = int_to_ptr.hbm [resolvable:$true] %s219_s18  ;;  %s254_s19 = int_to_ptr.hbm [resolvable:$true] %s253_s19 }
  0x1b   : > { %867 = dma.hbm_to_vmem [thread:$0]  (!%p1275_p0), %s220_s18, 256, %s222_s20, [#allocation6], %s1154_s8, %s1154_s8, %s1155_s9  }
  0x1c   : > { %s1156_s1 = smov [#allocation7]   ;;  %s1157_s22 = smov [#allocation8]  }
  0x1d   : > { %s238_s10 = sshll.u32 %s1156_s1, 4  ;;  %s255_s23 = sshll.u32 %s1157_s22, 4  ;;  %s239_s10 = int_to_ptr.vmem [resolvable:$true] %s238_s10  ;;  %s256_s23 = int_to_ptr.vmem [resolvable:$true] %s255_s23 }
  0x1e   : > { %s236_s29 = sshll.u32 %s1456_s3, 4  ;;  %p1444_p2 = scmp.ge.s32.totalorder %s1151_s27, 2  ;;  %s237_s29 = int_to_ptr.hbm [resolvable:$true] %s236_s29 }
  0x1f   : > { %870 = dma.hbm_to_vmem [thread:$0]  (!%p1275_p0), %s237_s29, 1024, %s239_s10, [#allocation6], %s1154_s8, %s1154_s8, %s1155_s9  }
  0x20   : > { %873 = dma.hbm_to_vmem [thread:$0]  (!%p1275_p0), %s254_s19, 1024, %s256_s23, [#allocation9], %s1154_s8, %s1154_s8, %s1155_s9  }
  0x21   : > { %268 = sbr.rel (%p1444_p2) target bundleno = 75 (0x4b), region = 40 }
  0x26   : > { %271 = sbr.rel (!%p1243_p5) target bundleno = 75 (0x4b), region = 44  ;;  %s272_s1 = sand.u32 (%p1243_p5), 1, %s1147_s26  }
  0x27   : > { %s732_s18 = sshll.u32 (%p1243_p5), %s1151_s27, 1  ;;  %s731_s20 = sshll.u32 (%p1243_p5), %s272_s1, 4 }
  0x28   : > { %s278_s16 = ssub.s32 (%p1243_p5), 3, %s732_s18  ;;  %s1301_s8 = scalar_lea.sflag (%p1243_p5), [#allocation3], %s272_s1 }
  0x29   : > { %p279_p3 = scmp.lt.s32.totalorder (%p1243_p5), %s278_s16, 2  ;;  %s276_s9 = scalar_lea.vmem (%p1243_p5), [#allocation2], %s731_s20 }
  0x2b   : > { %s1472_s16 = smov (!%p279_p3, %s278_s16), 2 }
  0x2c   : > { %s733_s10 = sshll.u32 %s1472_s16, 3 }
  0x2d   : > { %s282_s21 = ssub.s32 16, %s733_s10 }
  0x2e   : > { %s283_s29 = sshll.u32 %s282_s21, 4 }
  0x2f   : > { %284 = vsyncadd %s1301_s8, %s283_s29  ;;  %p1304_p5 = scmp.ne.s32.totalorder %s733_s10, 0  ;;  %s830_s17 = sshll.u32 %s1151_s27, 4 }
  0x30   : > { %s287_s23 = scalar_lea.hbm %s1435_s0, %s830_s17  ;;  %s1312_s18 = sshll.u32 %s276_s9, 4  ;;  %s292_s18 = int_to_ptr.vmem [resolvable:$true] %s1312_s18 }
  0x31   : > { %s289_s1 = sshll.u32 %s287_s23, 4  ;;  %s1443_s20 = sshll.u32 %s1472_s16, 7  ;;  %s1315_s1 = int_to_ptr.hbm [resolvable:$true] %s289_s1 }
  0x32   : > { %s1027_s21 = sshra.s32 %s1315_s1, 4  ;;  %s1029_s10 = sshrl.u32 %s1443_s20, 4  ;;  %s1028_s21 = int_to_ptr.hbm [resolvable:$true] %s1027_s21 }
  0x33   : > { %s1034_s29 = scalar_lea.hbm %s1028_s21, %s1029_s10  ;;  %s1038_s9 = scalar_lea.hbm %s1435_s0, 24 }
  0x34   : > { %p1035_p7 = scmp.ne.s32.totalorder %s1028_s21, %s1034_s29  ;;  %p1039_p10 = scmp.lt.s32.totalorder %s1028_s21, %s1435_s0 }
  0x35   : > { %p1040_p1 = scmp.lt.s32.totalorder %s1038_s9, %s1034_s29 }
  0x36   : > { %p1036_p8 = pnand %p1035_p7, %p1304_p5 }
  0x37   : > { %p1041_p0 = por %p1040_p1, %p1039_p10 }
  0x38   : > { %p1037_p9 = pneg %p1036_p8 }
  0x3a   : > { %p1042_p3 = pnand %p1041_p0, %p1037_p9 }
  0x3c   : > { %1045 = shalt.err (!%p1042_p3)
}
  0x3d   : > { %s1046_s20 = sshra.s32 %s292_s18, 4  ;;  %s1158_s19 = smov [#allocation2]   ;;  %s1047_s20 = int_to_ptr.vmem [resolvable:$true] %s1046_s20 }
  0x3e   : > { %s1053_s3 = scalar_lea.vmem %s1047_s20, %s1029_s10  ;;  %s1057_s17 = scalar_lea.vmem %s1158_s19, 32 }
  0x3f   : > { %p1054_p7 = scmp.ne.s32.totalorder %s1047_s20, %s1053_s3  ;;  %p1059_p4 = scmp.lt.s32.totalorder %s1057_s17, %s1053_s3 }
  0x41   : > { %p1055_p8 = pnand %p1054_p7, %p1304_p5 }
  0x43   : > { %p1056_p2 = pneg %p1055_p8 }
  0x45   : > { %p1061_p12 = pnand %p1059_p4, %p1056_p2 }
  0x47   : > { %1064 = shalt.err (!%p1061_p12)
}
  0x48   : > { %s1159_s21 = smov 128   ;;  %s1160_s29 = smov 8  }
  0x49   : > { %s1458_s9 = sshll.u32 %s1472_s16, 7 }
  0x4a   : > { %297 = dma.hbm_to_vmem [thread:$0]  (%p1304_p5), %s1315_s1, %s1458_s9, %s292_s18, %s1301_s8, %s1159_s21, %s1159_s21, %s1160_s29  }
  0x4b PF: > { %303 = sbr.rel (%p1264_p13) target bundleno = 573 (0x23d), region = 48  ;;  %s1344_s3 = sand.u32 (!%p1264_p13), 1, %s1143_s25  }
  0x4c   : > { %s739_s20 = sshll.u32 (!%p1264_p13), %s1344_s3, 4  ;;  %s306_s10 = scalar_lea.sflag (!%p1264_p13), [#allocation3], %s1344_s3 }
  0x4d   : > { %s309_s22 = scalar_lea.vmem (!%p1264_p13), [#allocation2], %s739_s20 }
  0x50   : > { %1122 = dma.done.wait (%p1249_p6), %s306_s10, 256  }
  0x51   : > { %1124 = vsyncadd (%p1249_p6), %s306_s10, 4294967040  ;;  %p1459_p4 = scmp.eq.s32.totalorder %s1225_s28, 0 }
  0x53   : > { %1126 = dma.done.wait (%p1459_p4), [#allocation6], 1280   ;;  %p1460_p12 = pmov %p1459_p4 }
  0x54   : > { %p1461_p13 = pmov %p1459_p4 }
  0x55   : > { %1128 = vsyncadd (%p1460_p12), [#allocation6], 4294966016 }
  0x56   : > { %1130 = dma.done.wait (%p1461_p13), [#allocation9], 1024   ;;  %p1462_p2 = pmov %p1459_p4 }
  0x57   : > { %v832_v0 = vld [vmem:[#allocation5 + $0x8] sm:$0xff]  ;;  %v831_v1 = vld [vmem:[#allocation5] sm:$0xff]  ;;  %vm390_vm0 = vcmask 261120   ;;  %v838_v7 = vld [vmem:[#allocation7 + $0x28] sm:$0xff]  ;;  %s355_s1 = scalar_lea.vmem [#allocation10], %s739_s20  ;;  %s601_s23 = scalar_lea.sflag [#allocation4], %s1344_s3 }
  0x58   : > { %1132 = vsyncadd (%p1462_p2), [#allocation9], 4294966272  ;;  %v367_v2 = vld [vmem:[%s309_s22] sm:$0xff]  ;;  %v840_v3 = vld [vmem:[#allocation7 + $0x38] sm:$0xff]  ;;  %400 = vmatpush.bf16.msra.mxu0 %v832_v0  ;;  %s822_s19 = sshll.u32 (%p1256_p11), %s1225_s28, 1 }
  0x59   : > { %v368_v4 = vld [vmem:[%s309_s22 + $0x8] sm:$0xff]  ;;  %489 = vmatpush.bf16.msra.mxu1 %v840_v3  ;;  %v839_v6 = vld [vmem:[#allocation7 + $0x30] sm:$0xff]  ;;  %v837_v8 = vld [vmem:[#allocation7 + $0x20] sm:$0xff]  ;;  %s609_s17 = ssub.s32 (%p1256_p11), 3, %s822_s19 }
  0x5a   : > { %v369_v5 = vpack.c.bf16 %v368_v4, %v367_v2  ;;  %v836_v9 = vld [vmem:[#allocation7 + $0x18] sm:$0xff]  ;;  %v835_v10 = vld [vmem:[#allocation7 + $0x10] sm:$0xff]  ;;  %v834_v11 = vld [vmem:[#allocation7 + $0x8] sm:$0xff]  ;;  %p610_p6 = scmp.lt.s32.totalorder (%p1256_p11), %s609_s17, 2 }
  0x5b   : > { %v833_v12 = vld [vmem:[#allocation7] sm:$0xff]  ;;  %v848_v13 = vld [vmem:[#allocation8 + $0x38] sm:$0xff]  ;;  %v926_v14 = vld [vmem:[%s1437_s2] ss:$0 sm:$0xff] }
  0x5c   : > { %401 = vmatpush.bf16.msra.mxu0 %v831_v1  ;;  %584 = vmatpush.bf16.msra.mxu2 %v848_v13  ;;  %v847_v30 = vld [vmem:[#allocation8 + $0x30] sm:$0xff]  ;;  %v846_v31 = vld [vmem:[#allocation8 + $0x28] sm:$0xff]  ;;  %v845_v32 = vld [vmem:[#allocation8 + $0x20] sm:$0xff] }
  0x5d   : > { %490 = vmatpush.bf16.msra.mxu1 %v839_v6  ;;  %v844_v33 = vld [vmem:[#allocation8 + $0x18] sm:$0xff]  ;;  %v843_v34 = vld [vmem:[#allocation8 + $0x10] sm:$0xff]  ;;  %v842_v35 = vld [vmem:[#allocation8 + $0x8] sm:$0xff] }
  0x5e   : > { %v841_v36 = vld [vmem:[#allocation8] sm:$0xff]  ;;  %v927_v37 = vld [vmem:[%s1439_s4] ss:$0 sm:$0xff] }
  0x5f   : > { %752 = vmatmul.msk.bf16.vlgmr.msra.gmra.mxu0 %vm390_vm0, %v369_v5  ;;  %v928_v53 = vld [vmem:[%s1441_s6] ss:$0 sm:$0xff] }
  0x60   : > { %585 = vmatpush.bf16.msra.mxu2 %v847_v30 }
  0x61   : > { %491 = vmatpush.bf16.msra.mxu1 %v838_v7 }
  0x64   : > { %586 = vmatpush.bf16.msra.mxu2 %v846_v31 }
  0x65   : > { %492 = vmatpush.bf16.msra.mxu1 %v837_v8 }
  0x68   : > { %587 = vmatpush.bf16.msra.mxu2 %v845_v32 }
  0x69   : > { %493 = vmatpush.bf16.msra.mxu1 %v836_v9 }
  0x6c   : > { %588 = vmatpush.bf16.msra.mxu2 %v844_v33 }
  0x6d   : > { %494 = vmatpush.bf16.msra.mxu1 %v835_v10 }
  0x70   : > { %589 = vmatpush.bf16.msra.mxu2 %v843_v34 }
  0x71   : > { %495 = vmatpush.bf16.msra.mxu1 %v834_v11 }
  0x74   : > { %590 = vmatpush.bf16.msra.mxu2 %v842_v35 }
  0x75   : > { %496 = vmatpush.bf16.msra.mxu1 %v833_v12 }
  0x78   : > { %591 = vmatpush.bf16.msra.mxu2 %v841_v36 }
  0xdc   : > { %v403_v15 = vpop.f32.mrf.mxu0 }
  0xdd   : > { %v404_v16 = vadd.f32 %v926_v14, %v403_v15 }
  0xdf   : > { %v410_v17 = vmin.f32 %v404_v16, 0.0  ;;  %vm408_vm1 = vcmp.gt.f32.partialorder %v404_v16, 0.0 }
  0xe1   : > { %v412_v18 = vmul.f32 1.442695, %v410_v17 }
  0xe3   : > { %929 = vpow2.f32 %v412_v18 }
  0xe4   : > { %v405_v19 = vpop.f32.mrf.mxu0 }
  0xe5   : > { %v406_v20 = vadd.f32 %v926_v14, %v405_v19 }
  0xe7   : > { %v411_v21 = vmin.f32 %v406_v20, 0.0  ;;  %vm409_vm2 = vcmp.gt.f32.partialorder %v406_v20, 0.0 }
  0xe9   : > { %v414_v22 = vmul.f32 1.442695, %v411_v21  ;;  %v930_v23 = vpop.eup %929 }
  0xea   : > { %v753_v24 = vadd.f32 -1.0, %v930_v23 }
  0xeb   : > { %931 = vpow2.f32 %v414_v22 }
  0xec   : > { %v418_v27 = vsel %vm408_vm1, %v404_v16, %v753_v24 }
  0xf1   : > { %v932_v25 = vpop.eup %931 }
  0xf2   : > { %v754_v26 = vadd.f32 -1.0, %v932_v25 }
  0xf4   : > { %v419_v28 = vsel %vm409_vm2, %v406_v20, %v754_v26 }
  0xf5   : > { %v420_v29 = vpack.c.bf16 %v419_v28, %v418_v27 }
  0xf7   : > { %497 = vmatmul.bf16.vlgmr.msra.gmra.mxu1 %v420_v29 }
 0x174   : > { %v498_v38 = vpop.f32.mrf.mxu1 }
 0x175   : > { %v499_v39 = vadd.f32 %v927_v37, %v498_v38 }
 0x177   : > { %v505_v40 = vmin.f32 %v499_v39, 0.0  ;;  %vm503_vm3 = vcmp.gt.f32.partialorder %v499_v39, 0.0 }
 0x179   : > { %v507_v41 = vmul.f32 1.442695, %v505_v40 }
 0x17b   : > { %933 = vpow2.f32 %v507_v41 }
 0x17c   : > { %v500_v42 = vpop.f32.mrf.mxu1 }
 0x17d   : > { %v501_v43 = vadd.f32 %v927_v37, %v500_v42 }
 0x17f   : > { %v506_v44 = vmin.f32 %v501_v43, 0.0  ;;  %vm504_vm4 = vcmp.gt.f32.partialorder %v501_v43, 0.0 }
 0x181   : > { %v509_v45 = vmul.f32 1.442695, %v506_v44  ;;  %v934_v46 = vpop.eup %933 }
 0x182   : > { %v787_v47 = vadd.f32 -1.0, %v934_v46 }
 0x183   : > { %935 = vpow2.f32 %v509_v45 }
 0x184   : > { %v513_v50 = vsel %vm503_vm3, %v499_v39, %v787_v47 }
 0x189   : > { %v936_v48 = vpop.eup %935 }
 0x18a   : > { %v788_v49 = vadd.f32 -1.0, %v936_v48 }
 0x18c   : > { %v514_v51 = vsel %vm504_vm4, %v501_v43, %v788_v49 }
 0x18d   : > { %v515_v52 = vpack.c.bf16 %v514_v51, %v513_v50 }
 0x18f   : > { %592 = vmatmul.bf16.vlgmr.msra.gmra.mxu2 %v515_v52 }
 0x212   : > { %v593_v54 = vpop.f32.mrf.mxu2 }
 0x213   : > { %v594_v55 = vadd.f32 %v928_v53, %v593_v54 }
 0x215   : > { %598 = vst [vmem:[%s355_s1] sm:$0xff] %v594_v55 }
 0x219   : > { %607 = sbr.rel (!%p1256_p11) target bundleno = 573 (0x23d), region = 68 }
 0x21a   : > { %v595_v56 = vpop.f32.mrf.mxu2 }
 0x21b   : > { %v596_v57 = vadd.f32 %v928_v53, %v595_v56 }
 0x21d   : > { %599 = vst [vmem:[%s355_s1 + $0x8] sm:$0xff] %v596_v57 }
 0x21e   : > { %s1474_s17 = smov (!%p610_p6, %s609_s17), 2 }
 0x21f   : > { %s823_s21 = sshll.u32 %s1474_s17, 3 }
 0x220   : > { %s613_s29 = ssub.s32 16, %s823_s21 }
 0x221   : > { %s614_s9 = sshll.u32 %s613_s29, 4 }
 0x222   : > { %615 = vsyncadd %s601_s23, %s614_s9  ;;  %p1382_p5 = scmp.ne.s32.totalorder %s823_s21, 0  ;;  %s849_s13 = sshll.u32 %s1225_s28, 4 }
 0x223   : > { %s618_s12 = scalar_lea.hbm %s1442_s7, %s849_s13  ;;  %s620_s15 = sshll.u32 %s355_s1, 4  ;;  %s1390_s15 = int_to_ptr.vmem [resolvable:$true] %s620_s15 }
 0x224   : > { %s622_s16 = sshll.u32 %s618_s12, 4  ;;  %s827_s8 = sshll.u32 %s1474_s17, 7  ;;  %s1392_s16 = int_to_ptr.hbm [resolvable:$true] %s622_s16 }
 0x225   : > { %s1066_s11 = sshra.s32 %s1390_s15, 4  ;;  %s1068_s18 = sshrl.u32 %s827_s8, 4  ;;  %s1067_s11 = int_to_ptr.vmem [resolvable:$true] %s1066_s11 }
 0x226   : > { %s1073_s19 = scalar_lea.vmem %s1067_s11, %s1068_s18  ;;  %s1161_s28 = smov [#allocation10]  }
 0x227   : > { %p1074_p11 = scmp.ne.s32.totalorder %s1067_s11, %s1073_s19  ;;  %s1077_s21 = scalar_lea.vmem %s1161_s28, 32 }
 0x228   : > { %p1079_p1 = scmp.lt.s32.totalorder %s1077_s21, %s1073_s19 }
 0x229   : > { %p1075_p9 = pnand %p1074_p11, %p1382_p5 }
 0x22b   : > { %p1076_p10 = pneg %p1075_p9 }
 0x22d   : > { %p1081_p0 = pnand %p1079_p1, %p1076_p10 }
 0x22f   : > { %1084 = shalt.err (!%p1081_p0)
}
 0x230   : > { %s1085_s1 = sshra.s32 %s1392_s16, 4  ;;  %s1096_s10 = scalar_lea.hbm %s1442_s7, 24  ;;  %s1086_s1 = int_to_ptr.hbm [resolvable:$true] %s1085_s1 }
 0x231   : > { %s1092_s29 = scalar_lea.hbm %s1086_s1, %s1068_s18  ;;  %p1097_p4 = scmp.lt.s32.totalorder %s1086_s1, %s1442_s7 }
 0x232   : > { %p1093_p3 = scmp.ne.s32.totalorder %s1086_s1, %s1092_s29  ;;  %p1098_p12 = scmp.lt.s32.totalorder %s1096_s10, %s1092_s29 }
 0x234   : > { %p1094_p7 = pnand %p1093_p3, %p1382_p5  ;;  %p1099_p13 = por %p1098_p12, %p1097_p4 }
 0x236   : > { %p1095_p8 = pneg %p1094_p7 }
 0x238   : > { %p1100_p2 = pnand %p1099_p13, %p1095_p8 }
 0x23a   : > { %1103 = shalt.err (!%p1100_p2)
}
 0x23b   : > { %s1162_s11 = smov 128   ;;  %s1163_s18 = smov 8  }
 0x23c   : > { %628 = dma.vmem_to_hbm [thread:$0]  (%p1382_p5), %s1390_s15, %s827_s8, %s1392_s16, %s601_s23, %s1162_s11, %s1162_s11, %s1163_s18  }
 0x23d PF: > { %s637_s19 = sand.u32 1, %s1139_s24   ;;  %p1464_p6 = scmp.ne.s32.totalorder %s1452_s14, 0 }
 0x23e   : > { %p1465_p11 = scmp.ge.s32.totalorder %s1151_s27, 2  ;;  %s638_s28 = scalar_lea.sflag [#allocation4], %s637_s19 }
 0x240   : > { %p875_p9 = pnand %p1465_p11, %p1464_p6 }
 0x242   : > { %p876_p10 = pneg %p875_p9 }
 0x244   : > { %1134 = dma.done.wait (%p876_p10), %s638_s28, 256  }
 0x245   : > { %1136 = vsyncadd (%p876_p10), %s638_s28, 4294967040  ;;  %s1466_s20 = sld [smem:[#allocation15_spill]]  ;;  %p22_p1 = scmp.ge.s32.totalorder %s1229_s30, 4  }
 0x246   : > { %s1467_s24 = smov %s1143_s25  ;;  %s1468_s25 = smov %s1147_s26 }
 0x247   : > { %s1470_s27 = smov %s1229_s30  ;;  %24 = sbr.rel (!%p22_p1) target bundleno = 10 (0xa), region = 105 }
 0x24b   : > { %s1469_s26 = smov %s1466_s20 }
 0x24c   :  { %644 = vsyncpa [#allocation3], 1 }
 0x24d   :  { %646 = vsyncpa [#allocation3 + $0x1], 1 }
 0x24e   :  { %647 = vsyncpa [#allocation6], 1 }
 0x24f   :  { %648 = vsyncpa [#allocation9], 1 }
 0x250   :  { %649 = vsyncpa [#allocation4], 1 }
 0x251   :  { %651 = vsyncpa [#allocation4 + $0x1], 1 }

// kernel: tpu_custom_call.1
= control target key start
LH: loop header
LB: loop body
LE: loop exit
PB: predicated region body
PF: predicated region fallthrough
CT: control target
= control target key end

     0   :  { %s1435_s0 = inlined_call_operand.hbm [shape: f32[24,32], index: 0, kind: input, shape index: {}]   ;;  %s1436_s1 = inlined_call_operand.hbm [shape: bf16[32,128], index: 1, kind: input, shape index: {}]   ;;  %s1437_s2 = inlined_call_operand.vmem [shape: f32[1,128], index: 2, kind: input, shape index: {}]   ;;  %s1438_s3 = inlined_call_operand.hbm [shape: bf16[128,128], index: 3, kind: input, shape index: {}]   ;;  %s1439_s4 = inlined_call_operand.vmem [shape: f32[1,128], index: 4, kind: input, shape index: {}]   ;;  %s1440_s5 = inlined_call_operand.hbm [shape: bf16[128,128], index: 5, kind: input, shape index: {}]   ;;  %s1441_s6 = inlined_call_operand.vmem [shape: f32[1,128], index: 6, kind: input, shape index: {}]   ;;  %s1442_s7 = inlined_call_operand.hbm [shape: f32[24,128], index: 7, kind: output, shape index: {}]  }
   0x1   :  { %1446 = sst [smem:[#allocation16_spill]] %s1436_s1 }
   0x2   :  { %1447 = sst [smem:[#allocation17_spill]] %s1438_s3 }
   0x3   :  { %12 = vsyncpa [#allocation3], 0 }
   0x4   :  { %14 = vsyncpa [#allocation3 + $0x1], 0 }
   0x5   :  { %15 = vsyncpa [#allocation6], 0 }
   0x6   :  { %16 = vsyncpa [#allocation9], 0 }
   0x7   :  { %17 = vsyncpa [#allocation4], 0 }
   0x8   :  { %19 = vsyncpa [#allocation4 + $0x1], 0  ;;  %s1204_s24 = smov 0   ;;  %s1206_s25 = smov 0  }
   0x9   :  { %s1208_s26 = smov 0   ;;  %s1210_s27 = smov 0  }
   0xa LB: > { %s1225_s28 = sadd.s32 4294967295, %s1151_s27   ;;  %s725_s29 = sadd.s32 4294967294, %s1151_s27   ;;  %s1151_s27 = sphi %s1210_s27, %s1470_s27   ;;  %s1147_s26 = sphi %s1208_s26, %s1469_s26   ;;  %s1143_s25 = sphi %s1206_s25, %s1468_s25   ;;  %s1139_s24 = sphi %s1204_s24, %s1467_s24  }
   0xb   : > { %s1229_s30 = sadd.s32 1, %s1151_s27   ;;  %s32_s8 = sadd.s32 1, %s1147_s26 }
   0xc   : > { %s29_s9 = ssub.s32 %s1151_s27, %s1229_s30  ;;  %p39_p0 = scmp.ne.s32.totalorder %s1147_s26, %s1143_s25 }
   0xd   : > { %p30_p1 = scmp.eq.s32.totalorder %s29_s9, 0  ;;  %p40_p2 = scmp.eq.s32.totalorder %s1151_s27, 0 }
   0xe   : > { %p45_p3 = scmp.ne.s32.totalorder %s1143_s25, %s1139_s24  ;;  %p1445_p4 = scmp.eq.s32.totalorder %s1225_s28, 0 }
   0xf   : > { %s1241_s10 = scalar_select %p30_p1, %s1147_s26, %s32_s8  }
  0x10   : > { %p1243_p5 = por %p40_p2, %p39_p0  ;;  %p1249_p6 = por %p1445_p4, %p45_p3 }
  0x11   : > { %1448 = sst [smem:[#allocation15_spill]] %s1241_s10  ;;  %p195_p7 = scmp.eq.s32.totalorder %s1225_s28, 1 }
  0x12   : > { %p201_p8 = scmp.eq.s32.totalorder %s725_s29, 1  ;;  %p726_p9 = scmp.ge.s32.totalorder %s1151_s27, 1 }
  0x13   : > { %p208_p10 = scmp.lt.s32.totalorder %s1151_s27, 3  ;;  %p1256_p11 = por %p195_p7, %p39_p0 }
  0x14   : > { %p1260_p12 = por %p201_p8, %p45_p3  ;;  %s1454_s1 = sld [smem:[#allocation16_spill]] }
  0x15   : > { %p1264_p13 = pnand %p726_p9, %p208_p10  ;;  %s1153_s19 = smov [#allocation5]  }
  0x16   : > { %s1452_s14 = scalar_select %p1260_p12, 1, 0 }
  0x17   : > { %p864_p1 = pneg %p1264_p13  ;;  %s221_s20 = sshll.u32 %s1153_s19, 4  ;;  %s222_s20 = int_to_ptr.vmem [resolvable:$true] %s221_s20 }
  0x18   : > { %s1456_s3 = sld [smem:[#allocation17_spill]]  ;;  %s1154_s8 = smov 64  }
  0x19   : > { %p1275_p0 = pnand %p864_p1, %p1445_p4  ;;  %s1155_s9 = smov 4  }
  0x1a   : > { %s219_s18 = sshll.u32 %s1454_s1, 4  ;;  %s253_s19 = sshll.u32 %s1440_s5, 4  ;;  %s220_s18 = int_to_ptr.hbm [resolvable:$true] %s219_s18  ;;  %s254_s19 = int_to_ptr.hbm [resolvable:$true] %s253_s19 }
  0x1b   : > { %867 = dma.hbm_to_vmem [thread:$0]  (!%p1275_p0), %s220_s18, 256, %s222_s20, [#allocation6], %s1154_s8, %s1154_s8, %s1155_s9  }
  0x1c   : > { %s1156_s1 = smov [#allocation7]   ;;  %s1157_s22 = smov [#allocation8]  }
  0x1d   : > { %s238_s10 = sshll.u32 %s1156_s1, 4  ;;  %s255_s23 = sshll.u32 %s1157_s22, 4  ;;  %s239_s10 = int_to_ptr.vmem [resolvable:$true] %s238_s10  ;;  %s256_s23 = int_to_ptr.vmem [resolvable:$true] %s255_s23 }
  0x1e   : > { %s236_s29 = sshll.u32 %s1456_s3, 4  ;;  %p1444_p2 = scmp.ge.s32.totalorder %s1151_s27, 2  ;;  %s237_s29 = int_to_ptr.hbm [resolvable:$true] %s236_s29 }
  0x1f   : > { %870 = dma.hbm_to_vmem [thread:$0]  (!%p1275_p0), %s237_s29, 1024, %s239_s10, [#allocation6], %s1154_s8, %s1154_s8, %s1155_s9  }
  0x20   : > { %873 = dma.hbm_to_vmem [thread:$0]  (!%p1275_p0), %s254_s19, 1024, %s256_s23, [#allocation9], %s1154_s8, %s1154_s8, %s1155_s9  }
  0x21   : > { %268 = sbr.rel (%p1444_p2) target bundleno = 75 (0x4b), region = 40 }
  0x26   : > { %271 = sbr.rel (!%p1243_p5) target bundleno = 75 (0x4b), region = 44  ;;  %s272_s1 = sand.u32 (%p1243_p5), 1, %s1147_s26  }
  0x27   : > { %s732_s18 = sshll.u32 (%p1243_p5), %s1151_s27, 1  ;;  %s731_s20 = sshll.u32 (%p1243_p5), %s272_s1, 4 }
  0x28   : > { %s278_s16 = ssub.s32 (%p1243_p5), 3, %s732_s18  ;;  %s1301_s8 = scalar_lea.sflag (%p1243_p5), [#allocation3], %s272_s1 }
  0x29   : > { %p279_p3 = scmp.lt.s32.totalorder (%p1243_p5), %s278_s16, 2  ;;  %s276_s9 = scalar_lea.vmem (%p1243_p5), [#allocation2], %s731_s20 }
  0x2b   : > { %s1472_s16 = smov (!%p279_p3, %s278_s16), 2 }
  0x2c   : > { %s733_s10 = sshll.u32 %s1472_s16, 3 }
  0x2d   : > { %s282_s21 = ssub.s32 16, %s733_s10 }
  0x2e   : > { %s283_s29 = sshll.u32 %s282_s21, 4 }
  0x2f   : > { %284 = vsyncadd %s1301_s8, %s283_s29  ;;  %p1304_p5 = scmp.ne.s32.totalorder %s733_s10, 0  ;;  %s830_s17 = sshll.u32 %s1151_s27, 4 }
  0x30   : > { %s287_s23 = scalar_lea.hbm %s1435_s0, %s830_s17  ;;  %s1312_s18 = sshll.u32 %s276_s9, 4  ;;  %s292_s18 = int_to_ptr.vmem [resolvable:$true] %s1312_s18 }
  0x31   : > { %s289_s1 = sshll.u32 %s287_s23, 4  ;;  %s1443_s20 = sshll.u32 %s1472_s16, 7  ;;  %s1315_s1 = int_to_ptr.hbm [resolvable:$true] %s289_s1 }
  0x32   : > { %s1027_s21 = sshra.s32 %s1315_s1, 4  ;;  %s1029_s10 = sshrl.u32 %s1443_s20, 4  ;;  %s1028_s21 = int_to_ptr.hbm [resolvable:$true] %s1027_s21 }
  0x33   : > { %s1034_s29 = scalar_lea.hbm %s1028_s21, %s1029_s10  ;;  %s1038_s9 = scalar_lea.hbm %s1435_s0, 24 }
  0x34   : > { %p1035_p7 = scmp.ne.s32.totalorder %s1028_s21, %s1034_s29  ;;  %p1039_p10 = scmp.lt.s32.totalorder %s1028_s21, %s1435_s0 }
  0x35   : > { %p1040_p1 = scmp.lt.s32.totalorder %s1038_s9, %s1034_s29 }
  0x36   : > { %p1036_p8 = pnand %p1035_p7, %p1304_p5 }
  0x37   : > { %p1041_p0 = por %p1040_p1, %p1039_p10 }
  0x38   : > { %p1037_p9 = pneg %p1036_p8 }
  0x3a   : > { %p1042_p3 = pnand %p1041_p0, %p1037_p9 }
  0x3c   : > { %1045 = shalt.err (!%p1042_p3)
}
  0x3d   : > { %s1046_s20 = sshra.s32 %s292_s18, 4  ;;  %s1158_s19 = smov [#allocation2]   ;;  %s1047_s20 = int_to_ptr.vmem [resolvable:$true] %s1046_s20 }
  0x3e   : > { %s1053_s3 = scalar_lea.vmem %s1047_s20, %s1029_s10  ;;  %s1057_s17 = scalar_lea.vmem %s1158_s19, 32 }
  0x3f   : > { %p1054_p7 = scmp.ne.s32.totalorder %s1047_s20, %s1053_s3  ;;  %p1059_p4 = scmp.lt.s32.totalorder %s1057_s17, %s1053_s3 }
  0x41   : > { %p1055_p8 = pnand %p1054_p7, %p1304_p5 }
  0x43   : > { %p1056_p2 = pneg %p1055_p8 }
  0x45   : > { %p1061_p12 = pnand %p1059_p4, %p1056_p2 }
  0x47   : > { %1064 = shalt.err (!%p1061_p12)
}
  0x48   : > { %s1159_s21 = smov 128   ;;  %s1160_s29 = smov 8  }
  0x49   : > { %s1458_s9 = sshll.u32 %s1472_s16, 7 }
  0x4a   : > { %297 = dma.hbm_to_vmem [thread:$0]  (%p1304_p5), %s1315_s1, %s1458_s9, %s292_s18, %s1301_s8, %s1159_s21, %s1159_s21, %s1160_s29  }
  0x4b PF: > { %303 = sbr.rel (%p1264_p13) target bundleno = 573 (0x23d), region = 48  ;;  %s1344_s3 = sand.u32 (!%p1264_p13), 1, %s1143_s25  }
  0x4c   : > { %s739_s20 = sshll.u32 (!%p1264_p13), %s1344_s3, 4  ;;  %s306_s10 = scalar_lea.sflag (!%p1264_p13), [#allocation3], %s1344_s3 }
  0x4d   : > { %s309_s22 = scalar_lea.vmem (!%p1264_p13), [#allocation2], %s739_s20 }
  0x50   : > { %1122 = dma.done.wait (%p1249_p6), %s306_s10, 256  }
  0x51   : > { %1124 = vsyncadd (%p1249_p6), %s306_s10, 4294967040  ;;  %p1459_p4 = scmp.eq.s32.totalorder %s1225_s28, 0 }
  0x53   : > { %1126 = dma.done.wait (%p1459_p4), [#allocation6], 1280   ;;  %p1460_p12 = pmov %p1459_p4 }
  0x54   : > { %p1461_p13 = pmov %p1459_p4 }
  0x55   : > { %1128 = vsyncadd (%p1460_p12), [#allocation6], 4294966016 }
  0x56   : > { %1130 = dma.done.wait (%p1461_p13), [#allocation9], 1024   ;;  %p1462_p2 = pmov %p1459_p4 }
  0x57   : > { %v832_v0 = vld [vmem:[#allocation5 + $0x8] sm:$0xff]  ;;  %v831_v1 = vld [vmem:[#allocation5] sm:$0xff]  ;;  %vm390_vm0 = vcmask 261120   ;;  %v838_v7 = vld [vmem:[#allocation7 + $0x28] sm:$0xff]  ;;  %s355_s1 = scalar_lea.vmem [#allocation10], %s739_s20  ;;  %s601_s23 = scalar_lea.sflag [#allocation4], %s1344_s3 }
  0x58   : > { %1132 = vsyncadd (%p1462_p2), [#allocation9], 4294966272  ;;  %v367_v2 = vld [vmem:[%s309_s22] sm:$0xff]  ;;  %v840_v3 = vld [vmem:[#allocation7 + $0x38] sm:$0xff]  ;;  %400 = vmatpush.bf16.msra.mxu0 %v832_v0  ;;  %s822_s19 = sshll.u32 (%p1256_p11), %s1225_s28, 1 }
  0x59   : > { %v368_v4 = vld [vmem:[%s309_s22 + $0x8] sm:$0xff]  ;;  %489 = vmatpush.bf16.msra.mxu1 %v840_v3  ;;  %v839_v6 = vld [vmem:[#allocation7 + $0x30] sm:$0xff]  ;;  %v837_v8 = vld [vmem:[#allocation7 + $0x20] sm:$0xff]  ;;  %s609_s17 = ssub.s32 (%p1256_p11), 3, %s822_s19 }
  0x5a   : > { %v369_v5 = vpack.c.bf16 %v368_v4, %v367_v2  ;;  %v836_v9 = vld [vmem:[#allocation7 + $0x18] sm:$0xff]  ;;  %v835_v10 = vld [vmem:[#allocation7 + $0x10] sm:$0xff]  ;;  %v834_v11 = vld [vmem:[#allocation7 + $0x8] sm:$0xff]  ;;  %p610_p6 = scmp.lt.s32.totalorder (%p1256_p11), %s609_s17, 2 }
  0x5b   : > { %v833_v12 = vld [vmem:[#allocation7] sm:$0xff]  ;;  %v848_v13 = vld [vmem:[#allocation8 + $0x38] sm:$0xff]  ;;  %v926_v14 = vld [vmem:[%s1437_s2] ss:$0 sm:$0xff] }
  0x5c   : > { %401 = vmatpush.bf16.msra.mxu0 %v831_v1  ;;  %584 = vmatpush.bf16.msra.mxu2 %v848_v13  ;;  %v847_v30 = vld [vmem:[#allocation8 + $0x30] sm:$0xff]  ;;  %v846_v31 = vld [vmem:[#allocation8 + $0x28] sm:$0xff]  ;;  %v845_v32 = vld [vmem:[#allocation8 + $0x20] sm:$0xff] }
  0x5d   : > { %490 = vmatpush.bf16.msra.mxu1 %v839_v6  ;;  %v844_v33 = vld [vmem:[#allocation8 + $0x18] sm:$0xff]  ;;  %v843_v34 = vld [vmem:[#allocation8 + $0x10] sm:$0xff]  ;;  %v842_v35 = vld [vmem:[#allocation8 + $0x8] sm:$0xff] }
  0x5e   : > { %v841_v36 = vld [vmem:[#allocation8] sm:$0xff]  ;;  %v927_v37 = vld [vmem:[%s1439_s4] ss:$0 sm:$0xff] }
  0x5f   : > { %752 = vmatmul.msk.bf16.vlgmr.msra.gmra.mxu0 %vm390_vm0, %v369_v5  ;;  %v928_v53 = vld [vmem:[%s1441_s6] ss:$0 sm:$0xff] }
  0x60   : > { %585 = vmatpush.bf16.msra.mxu2 %v847_v30 }
  0x61   : > { %491 = vmatpush.bf16.msra.mxu1 %v838_v7 }
  0x64   : > { %586 = vmatpush.bf16.msra.mxu2 %v846_v31 }
  0x65   : > { %492 = vmatpush.bf16.msra.mxu1 %v837_v8 }
  0x68   : > { %587 = vmatpush.bf16.msra.mxu2 %v845_v32 }
  0x69   : > { %493 = vmatpush.bf16.msra.mxu1 %v836_v9 }
  0x6c   : > { %588 = vmatpush.bf16.msra.mxu2 %v844_v33 }
  0x6d   : > { %494 = vmatpush.bf16.msra.mxu1 %v835_v10 }
  0x70   : > { %589 = vmatpush.bf16.msra.mxu2 %v843_v34 }
  0x71   : > { %495 = vmatpush.bf16.msra.mxu1 %v834_v11 }
  0x74   : > { %590 = vmatpush.bf16.msra.mxu2 %v842_v35 }
  0x75   : > { %496 = vmatpush.bf16.msra.mxu1 %v833_v12 }
  0x78   : > { %591 = vmatpush.bf16.msra.mxu2 %v841_v36 }
  0xdc   : > { %v403_v15 = vpop.f32.mrf.mxu0 }
  0xdd   : > { %v404_v16 = vadd.f32 %v926_v14, %v403_v15 }
  0xdf   : > { %v410_v17 = vmin.f32 %v404_v16, 0.0  ;;  %vm408_vm1 = vcmp.gt.f32.partialorder %v404_v16, 0.0 }
  0xe1   : > { %v412_v18 = vmul.f32 1.442695, %v410_v17 }
  0xe3   : > { %929 = vpow2.f32 %v412_v18 }
  0xe4   : > { %v405_v19 = vpop.f32.mrf.mxu0 }
  0xe5   : > { %v406_v20 = vadd.f32 %v926_v14, %v405_v19 }
  0xe7   : > { %v411_v21 = vmin.f32 %v406_v20, 0.0  ;;  %vm409_vm2 = vcmp.gt.f32.partialorder %v406_v20, 0.0 }
  0xe9   : > { %v414_v22 = vmul.f32 1.442695, %v411_v21  ;;  %v930_v23 = vpop.eup %929 }
  0xea   : > { %v753_v24 = vadd.f32 -1.0, %v930_v23 }
  0xeb   : > { %931 = vpow2.f32 %v414_v22 }
  0xec   : > { %v418_v27 = vsel %vm408_vm1, %v404_v16, %v753_v24 }
  0xf1   : > { %v932_v25 = vpop.eup %931 }
  0xf2   : > { %v754_v26 = vadd.f32 -1.0, %v932_v25 }
  0xf4   : > { %v419_v28 = vsel %vm409_vm2, %v406_v20, %v754_v26 }
  0xf5   : > { %v420_v29 = vpack.c.bf16 %v419_v28, %v418_v27 }
  0xf7   : > { %497 = vmatmul.bf16.vlgmr.msra.gmra.mxu1 %v420_v29 }
 0x174   : > { %v498_v38 = vpop.f32.mrf.mxu1 }
 0x175   : > { %v499_v39 = vadd.f32 %v927_v37, %v498_v38 }
 0x177   : > { %v505_v40 = vmin.f32 %v499_v39, 0.0  ;;  %vm503_vm3 = vcmp.gt.f32.partialorder %v499_v39, 0.0 }
 0x179   : > { %v507_v41 = vmul.f32 1.442695, %v505_v40 }
 0x17b   : > { %933 = vpow2.f32 %v507_v41 }
 0x17c   : > { %v500_v42 = vpop.f32.mrf.mxu1 }
 0x17d   : > { %v501_v43 = vadd.f32 %v927_v37, %v500_v42 }
 0x17f   : > { %v506_v44 = vmin.f32 %v501_v43, 0.0  ;;  %vm504_vm4 = vcmp.gt.f32.partialorder %v501_v43, 0.0 }
 0x181   : > { %v509_v45 = vmul.f32 1.442695, %v506_v44  ;;  %v934_v46 = vpop.eup %933 }
 0x182   : > { %v787_v47 = vadd.f32 -1.0, %v934_v46 }
 0x183   : > { %935 = vpow2.f32 %v509_v45 }
 0x184   : > { %v513_v50 = vsel %vm503_vm3, %v499_v39, %v787_v47 }
 0x189   : > { %v936_v48 = vpop.eup %935 }
 0x18a   : > { %v788_v49 = vadd.f32 -1.0, %v936_v48 }
 0x18c   : > { %v514_v51 = vsel %vm504_vm4, %v501_v43, %v788_v49 }
 0x18d   : > { %v515_v52 = vpack.c.bf16 %v514_v51, %v513_v50 }
 0x18f   : > { %592 = vmatmul.bf16.vlgmr.msra.gmra.mxu2 %v515_v52 }
 0x212   : > { %v593_v54 = vpop.f32.mrf.mxu2 }
 0x213   : > { %v594_v55 = vadd.f32 %v928_v53, %v593_v54 }
 0x215   : > { %598 = vst [vmem:[%s355_s1] sm:$0xff] %v594_v55 }
 0x219   : > { %607 = sbr.rel (!%p1256_p11) target bundleno = 573 (0x23d), region = 68 }
 0x21a   : > { %v595_v56 = vpop.f32.mrf.mxu2 }
 0x21b   : > { %v596_v57 = vadd.f32 %v928_v53, %v595_v56 }
 0x21d   : > { %599 = vst [vmem:[%s355_s1 + $0x8] sm:$0xff] %v596_v57 }
 0x21e   : > { %s1474_s17 = smov (!%p610_p6, %s609_s17), 2 }
 0x21f   : > { %s823_s21 = sshll.u32 %s1474_s17, 3 }
 0x220   : > { %s613_s29 = ssub.s32 16, %s823_s21 }
 0x221   : > { %s614_s9 = sshll.u32 %s613_s29, 4 }
 0x222   : > { %615 = vsyncadd %s601_s23, %s614_s9  ;;  %p1382_p5 = scmp.ne.s32.totalorder %s823_s21, 0  ;;  %s849_s13 = sshll.u32 %s1225_s28, 4 }
 0x223   : > { %s618_s12 = scalar_lea.hbm %s1442_s7, %s849_s13  ;;  %s620_s15 = sshll.u32 %s355_s1, 4  ;;  %s1390_s15 = int_to_ptr.vmem [resolvable:$true] %s620_s15 }
 0x224   : > { %s622_s16 = sshll.u32 %s618_s12, 4  ;;  %s827_s8 = sshll.u32 %s1474_s17, 7  ;;  %s1392_s16 = int_to_ptr.hbm [resolvable:$true] %s622_s16 }
 0x225   : > { %s1066_s11 = sshra.s32 %s1390_s15, 4  ;;  %s1068_s18 = sshrl.u32 %s827_s8, 4  ;;  %s1067_s11 = int_to_ptr.vmem [resolvable:$true] %s1066_s11 }
 0x226   : > { %s1073_s19 = scalar_lea.vmem %s1067_s11, %s1068_s18  ;;  %s1161_s28 = smov [#allocation10]  }
 0x227   : > { %p1074_p11 = scmp.ne.s32.totalorder %s1067_s11, %s1073_s19  ;;  %s1077_s21 = scalar_lea.vmem %s1161_s28, 32 }
 0x228   : > { %p1079_p1 = scmp.lt.s32.totalorder %s1077_s21, %s1073_s19 }
 0x229   : > { %p1075_p9 = pnand %p1074_p11, %p1382_p5 }
 0x22b   : > { %p1076_p10 = pneg %p1075_p9 }
 0x22d   : > { %p1081_p0 = pnand %p1079_p1, %p1076_p10 }
 0x22f   : > { %1084 = shalt.err (!%p1081_p0)
}
 0x230   : > { %s1085_s1 = sshra.s32 %s1392_s16, 4  ;;  %s1096_s10 = scalar_lea.hbm %s1442_s7, 24  ;;  %s1086_s1 = int_to_ptr.hbm [resolvable:$true] %s1085_s1 }
 0x231   : > { %s1092_s29 = scalar_lea.hbm %s1086_s1, %s1068_s18  ;;  %p1097_p4 = scmp.lt.s32.totalorder %s1086_s1, %s1442_s7 }
 0x232   : > { %p1093_p3 = scmp.ne.s32.totalorder %s1086_s1, %s1092_s29  ;;  %p1098_p12 = scmp.lt.s32.totalorder %s1096_s10, %s1092_s29 }
 0x234   : > { %p1094_p7 = pnand %p1093_p3, %p1382_p5  ;;  %p1099_p13 = por %p1098_p12, %p1097_p4 }
 0x236   : > { %p1095_p8 = pneg %p1094_p7 }
 0x238   : > { %p1100_p2 = pnand %p1099_p13, %p1095_p8 }
 0x23a   : > { %1103 = shalt.err (!%p1100_p2)
}
 0x23b   : > { %s1162_s11 = smov 128   ;;  %s1163_s18 = smov 8  }
 0x23c   : > { %628 = dma.vmem_to_hbm [thread:$0]  (%p1382_p5), %s1390_s15, %s827_s8, %s1392_s16, %s601_s23, %s1162_s11, %s1162_s11, %s1163_s18  }
 0x23d PF: > { %s637_s19 = sand.u32 1, %s1139_s24   ;;  %p1464_p6 = scmp.ne.s32.totalorder %s1452_s14, 0 }
 0x23e   : > { %p1465_p11 = scmp.ge.s32.totalorder %s1151_s27, 2  ;;  %s638_s28 = scalar_lea.sflag [#allocation4], %s637_s19 }
 0x240   : > { %p875_p9 = pnand %p1465_p11, %p1464_p6 }
 0x242   : > { %p876_p10 = pneg %p875_p9 }
 0x244   : > { %1134 = dma.done.wait (%p876_p10), %s638_s28, 256  }
 0x245   : > { %1136 = vsyncadd (%p876_p10), %s638_s28, 4294967040  ;;  %s1466_s20 = sld [smem:[#allocation15_spill]]  ;;  %p22_p1 = scmp.ge.s32.totalorder %s1229_s30, 4  }
 0x246   : > { %s1467_s24 = smov %s1143_s25  ;;  %s1468_s25 = smov %s1147_s26 }
 0x247   : > { %s1470_s27 = smov %s1229_s30  ;;  %24 = sbr.rel (!%p22_p1) target bundleno = 10 (0xa), region = 105 }
 0x24b   : > { %s1469_s26 = smov %s1466_s20 }
 0x24c   :  { %644 = vsyncpa [#allocation3], 1 }
 0x24d   :  { %646 = vsyncpa [#allocation3 + $0x1], 1 }
 0x24e   :  { %647 = vsyncpa [#allocation6], 1 }
 0x24f   :  { %648 = vsyncpa [#allocation9], 1 }
 0x250   :  { %649 = vsyncpa [#allocation4], 1 }
 0x251   :  { %651 = vsyncpa [#allocation4 + $0x1], 1 }

</bundles_post_ra>
